<compile_context>
chip_gen: v7x
topology: tpu7x:2x2x1
jax: 0.10.0
libtpu: 0.0.40
codegen_flags: <defaults>
</compile_context>

<pallas_src>
import jax
import jax.numpy as jnp
from jax.experimental import pallas as pl
from jax.experimental.pallas import tpu as pltpu

_MIB = 1024 * 1024


def _round_up(x, m):
    return ((x + m - 1) // m) * m


def _pick_tile(total, target, mult):
    """Largest multiple of `mult` that divides `total` and is <= target."""
    t = max((min(target, total) // mult) * mult, mult)
    while total % t:
        t -= mult
    return t


def _vmem_capacity_bytes():
    """Physical VMEM per TensorCore; conservative (v7x, 64 MiB) fallback."""
    try:
        cap = int(getattr(pltpu.get_tpu_info(), "vmem_capacity_bytes"))
        if cap > 0:
            return cap
    except Exception:
        pass
    return 64 * _MIB


# ---------------------------------------------------------------------------
# Kernels
# ---------------------------------------------------------------------------
def _ffn_kernel_single(x_ref, w1_ref, b1_ref, w2_ref, b2_ref, o_ref):
    """Whole hidden dim resident in VMEM: one fused pass, no accumulator."""
    x = x_ref[...].astype(jnp.bfloat16)                      # in-kernel cast (VPU)
    h = jnp.dot(x, w1_ref[...], preferred_element_type=jnp.float32)
    h = jnp.maximum(h + b1_ref[...], 0.0)                    # bias + ReLU in f32
    # TODO(synk): train-mode dropout (pltpu.prng_random_bits mask) not emitted;
    # eval-mode nn.Dropout is the identity, which is what we implement.
    y = jnp.dot(h.astype(jnp.bfloat16), w2_ref[...],
                preferred_element_type=jnp.float32)
    o_ref[...] = (y + b2_ref[...]).astype(o_ref.dtype)


def _ffn_kernel_stream(x_ref, w1_ref, b1_ref, w2_ref, b2_ref, o_ref, acc_ref):
    """Hidden dim streamed in th-slices; f32 VMEM accumulator for 2nd matmul."""
    k = pl.program_id(1)
    x = x_ref[...].astype(jnp.bfloat16)
    h = jnp.dot(x, w1_ref[...], preferred_element_type=jnp.float32)
    h = jnp.maximum(h + b1_ref[...], 0.0)
    y = jnp.dot(h.astype(jnp.bfloat16), w2_ref[...],
                preferred_element_type=jnp.float32)

    @pl.when(k == 0)
    def _():
        acc_ref[...] = y            # direct assign: no zero-init + add round-trip

    @pl.when(k > 0)
    def _():
        acc_ref[...] += y

    @pl.when(k == pl.num_programs(1) - 1)
    def _():
        o_ref[...] = (acc_ref[...] + b2_ref[...]).astype(o_ref.dtype)


# ---------------------------------------------------------------------------
# Tile selection
# ---------------------------------------------------------------------------
def _select_tiles(M, C_pad, H_pad, x_bytes, out_bytes, budget, weight_bufs):
    """Pick (tm, th, single_pass) so the pipelined working set fits `budget`."""

    def footprint(tm, th, single):
        wb = 2 if single else weight_bufs
        b = 2 * tm * C_pad * x_bytes             # x tile, double buffered
        b += 2 * tm * C_pad * out_bytes          # out tile, double buffered
        b += wb * (C_pad * th + th * C_pad) * 2  # W1 + W2 slices (bf16)
        b += 2 * (th + C_pad) * 4                # b1 slice + b2 (f32)
        b += tm * th * 4                         # f32 hidden intermediate
        b += tm * C_pad * 4                      # f32 second-matmul result
        if not single:
            b += tm * C_pad * 4                  # acc scratch
        return b

    M8 = _round_up(max(M, 1), 8)
    big_vmem = budget > 70 * _MIB
    tm_cap = min(1024 if big_vmem else 512, M8)
    # Keep both v7x TensorCores busy: aim for >= 2 token tiles when M is large.
    if M8 >= 512:
        tm_cap = min(tm_cap, max(256, _round_up((M8 + 1) // 2, 8)))
    cands = [tm_cap] + [t for t in (1024, 768, 640, 512, 384, 256, 128, 64, 32, 16, 8)
                        if t < tm_cap]

    # Preferred: whole hidden dim resident -> weights DMA'd exactly once.
    for tm in cands:
        if footprint(tm, H_pad, True) <= budget:
            return tm, H_pad, True

    # Streaming fallback.  Intensity scales with tm (not th), so prefer a large
    # tm and trade th down — but keep th >= 256 to amortize per-step overhead.
    for tm in cands:
        for th_target in (512, 384, 256):
            th = _pick_tile(H_pad, th_target, 128)
            if footprint(tm, th, False) <= budget:
                return tm, th, False
    for tm in cands:                      # last resort
        if footprint(tm, 128, False) <= budget:
            return tm, 128, False
    return cands[-1], 128, False


# ---------------------------------------------------------------------------
# Wrapper
# ---------------------------------------------------------------------------
@jax.jit
def feed_forward(x, w1p, b1p, w2p, b2p):
    """Fused FeedForward: relu(x @ W1 + b1) @ W2 + b2 (dropout = eval identity).

    x: (B, T, C) activations.  w1p/b1p/w2p/b2p: outputs of `prepare_params`
    (bf16 weights, f32 biases, lane dims padded to multiples of 128).
    """
    B, T, C = x.shape
    C_pad, H_pad = w1p.shape
    M = B * T
    out_dtype = x.dtype  # keep module semantics (f32 in -> f32 out); bf16 possible

    cap = _vmem_capacity_bytes()
    vmem_limit = int(cap * 0.85)      # leave compiler headroom (critical on v7x)
    budget = int(cap * 0.75)          # working-set budget used for tile sizing
    weight_bufs = 3 if cap > 96 * _MIB else 2  # deeper weight pipeline on v5e/v6e

    tm, th, single = _select_tiles(
        M, C_pad, H_pad,
        x_bytes=jnp.dtype(x.dtype).itemsize,
        out_bytes=jnp.dtype(out_dtype).itemsize,
        budget=budget, weight_bufs=weight_bufs)

    M_pad = _round_up(M, tm)
    x2 = x.reshape(M, C)
    if M_pad != M or C_pad != C:
        x2 = jnp.pad(x2, ((0, M_pad - M), (0, C_pad - C)))

    if single:
        grid = (M_pad // tm,)
        grid_spec = pltpu.PrefetchScalarGridSpec(
            num_scalar_prefetch=0,
            grid=grid,
            in_specs=[
                pl.BlockSpec((tm, C_pad), lambda i: (i, 0)),      # x tile
                pl.BlockSpec((C_pad, H_pad), lambda i: (0, 0)),   # W1^T (resident)
                pl.BlockSpec((1, H_pad), lambda i: (0, 0)),       # b1
                pl.BlockSpec((H_pad, C_pad), lambda i: (0, 0)),   # W2^T (resident)
                pl.BlockSpec((1, C_pad), lambda i: (0, 0)),       # b2
            ],
            out_specs=pl.BlockSpec((tm, C_pad), lambda i: (i, 0)),
            scratch_shapes=[],
        )
        kernel = _ffn_kernel_single
        dims = ("parallel",)
    else:
        wkw = dict(pipeline_mode=pl.Buffered(weight_bufs)) if weight_bufs != 2 else {}
        grid = (M_pad // tm, H_pad // th)
        grid_spec = pltpu.PrefetchScalarGridSpec(
            num_scalar_prefetch=0,
            grid=grid,
            in_specs=[
                pl.BlockSpec((tm, C_pad), lambda i, k: (i, 0)),          # x tile
                pl.BlockSpec((C_pad, th), lambda i, k: (0, k), **wkw),   # W1^T slice
                pl.BlockSpec((1, th), lambda i, k: (0, k)),              # b1 slice
                pl.BlockSpec((th, C_pad), lambda i, k: (k, 0), **wkw),   # W2^T slice
                pl.BlockSpec((1, C_pad), lambda i, k: (0, 0)),           # b2
            ],
            out_specs=pl.BlockSpec((tm, C_pad), lambda i, k: (i, 0)),
            scratch_shapes=[pltpu.VMEM((tm, C_pad), jnp.float32)],
        )
        kernel = _ffn_kernel_stream
        dims = ("parallel", "arbitrary")

    out2 = pl.pallas_call(
        kernel,
        out_shape=jax.ShapeDtypeStruct((M_pad, C_pad), out_dtype),
        grid_spec=grid_spec,
        compiler_params=pltpu.CompilerParams(
            dimension_semantics=dims,
            vmem_limit_bytes=vmem_limit,
        ),
    )(x2, w1p, b1p, w2p, b2p)

    return out2[:M, :C].reshape(B, T, C)


# ---------------------------------------------------------------------------
# Params
# ---------------------------------------------------------------------------
def init_params(key, n_embd):
    """Deterministic init mimicking nn.Linear's uniform(-1/sqrt(fan_in), ...)."""
    hidden = 4 * n_embd
    k1, k2, k3, k4 = jax.random.split(key, 4)
    bound1 = 1.0 / jnp.sqrt(n_embd)
    bound2 = 1.0 / jnp.sqrt(hidden)
    # Stored pre-transposed: (in_features, out_features)
    w1_t = jax.random.uniform(k1, (n_embd, hidden), jnp.float32, -bound1, bound1)
    b1 = jax.random.uniform(k2, (hidden,), jnp.float32, -bound1, bound1)
    w2_t = jax.random.uniform(k3, (hidden, n_embd), jnp.float32, -bound2, bound2)
    b2 = jax.random.uniform(k4, (n_embd,), jnp.float32, -bound2, bound2)
    return w1_t, b1, w2_t, b2


def prepare_params(w1_t, b1, w2_t, b2):
    """One-time weight prep (hoisted out of the forward path): bf16 cast + pad."""
    C, H = w1_t.shape
    C_pad = _round_up(C, 128)
    H_pad = _round_up(H, 128)
    w1p = jnp.pad(w1_t.astype(jnp.bfloat16), ((0, C_pad - C), (0, H_pad - H)))
    b1p = jnp.pad(b1.astype(jnp.float32), (0, H_pad - H)).reshape(1, H_pad)
    w2p = jnp.pad(w2_t.astype(jnp.bfloat16), ((0, H_pad - H), (0, C_pad - C)))
    b2p = jnp.pad(b2.astype(jnp.float32), (0, C_pad - C)).reshape(1, C_pad)
    return w1p, b1p, w2p, b2p


if __name__ == "__main__":
    key = jax.random.PRNGKey(0)
    B, T, n_embd = 2, 8, 32        # small shapes: batch=2, seq=8, embed=32
    dropout_p = 0.1                # unused at inference (nn.Dropout == identity)

    kx, kp = jax.random.split(key)
    x = jax.random.normal(kx, (B, T, n_embd), dtype=jnp.float32)
    w1_t, b1, w2_t, b2 = init_params(kp, n_embd)
    params = prepare_params(w1_t, b1, w2_t, b2)   # done ONCE, not per forward call

    y = feed_forward(x, *params)
    y = jax.block_until_ready(y)

    # Pure-JAX f32 reference (kernel uses bf16 matmul operands with f32
    # accumulation, so use a bf16-appropriate tolerance).
    h_ref = jnp.maximum(x.reshape(-1, n_embd) @ w1_t + b1, 0.0)
    y_ref = (h_ref @ w2_t + b2).reshape(B, T, n_embd)
    assert jnp.allclose(y, y_ref, atol=2e-2, rtol=2e-2), (
        float(jnp.max(jnp.abs(y - y_ref))))

    print("KERNEL_OK")
</pallas_src>

<mosaic_0001>
module attributes {stable_mosaic.version = 11 : i64} {
  func.func @_ffn_kernel_single(%arg0: i32, %arg1: memref<16x128xf32, #tpu.memory_space<vmem>>, %arg2: memref<128x128xbf16, #tpu.memory_space<vmem>>, %arg3: memref<1x128xf32, #tpu.memory_space<vmem>>, %arg4: memref<128x128xbf16, #tpu.memory_space<vmem>>, %arg5: memref<1x128xf32, #tpu.memory_space<vmem>>, %arg6: memref<16x128xf32, #tpu.memory_space<vmem>>) attributes {dimension_semantics = [#tpu.dimension_semantics<parallel>], iteration_bounds = array<i64: 1>, scalar_prefetch = 0 : i64, scratch_operands = 0 : i64, tpu.core_type = #tpu.core_type<tc>, window_params = [{transform_indices = @transform_0, window_bounds = array<i64: 16, 128>}, {pipeline_mode = #tpu.pipeline_mode<synchronous>, transform_indices = @transform_1, window_bounds = array<i64: 128, 128>}, {pipeline_mode = #tpu.pipeline_mode<synchronous>, transform_indices = @transform_2, window_bounds = array<i64: 1, 128>}, {pipeline_mode = #tpu.pipeline_mode<synchronous>, transform_indices = @transform_3, window_bounds = array<i64: 128, 128>}, {pipeline_mode = #tpu.pipeline_mode<synchronous>, transform_indices = @transform_4, window_bounds = array<i64: 1, 128>}, {transform_indices = @transform_5, window_bounds = array<i64: 16, 128>}]} {
    %c0 = arith.constant 0 : index
    %c0_0 = arith.constant 0 : index
    %0 = vector.load %arg1[%c0, %c0_0] : memref<16x128xf32, #tpu.memory_space<vmem>>, vector<16x128xf32>
    %1 = arith.truncf %0 : vector<16x128xf32> to vector<16x128xbf16>
    %c0_1 = arith.constant 0 : index
    %c0_2 = arith.constant 0 : index
    %2 = vector.load %arg2[%c0_1, %c0_2] : memref<128x128xbf16, #tpu.memory_space<vmem>>, vector<128x128xbf16>
    %cst = arith.constant dense<0.000000e+00> : vector<16x128xf32>
    %3 = tpu.matmul %1, %2, %cst {dimension_numbers = #tpu.dot_dimension_numbers<[1], [0], [0], [1], [0, 0, 1, 1], [], []>} : vector<16x128xbf16>, vector<128x128xbf16>, vector<16x128xf32> -> vector<16x128xf32>
    %c0_3 = arith.constant 0 : index
    %c0_4 = arith.constant 0 : index
    %4 = vector.load %arg3[%c0_3, %c0_4] : memref<1x128xf32, #tpu.memory_space<vmem>>, vector<1x128xf32>
    %5 = vector.broadcast %4 : vector<1x128xf32> to vector<16x128xf32>
    %6 = arith.addf %3, %5 : vector<16x128xf32>
    %cst_5 = arith.constant 0.000000e+00 : f32
    %7 = vector.broadcast %cst_5 : f32 to vector<16x128xf32>
    %8 = arith.maximumf %6, %7 : vector<16x128xf32>
    %9 = arith.truncf %8 : vector<16x128xf32> to vector<16x128xbf16>
    %c0_6 = arith.constant 0 : index
    %c0_7 = arith.constant 0 : index
    %10 = vector.load %arg4[%c0_6, %c0_7] : memref<128x128xbf16, #tpu.memory_space<vmem>>, vector<128x128xbf16>
    %cst_8 = arith.constant dense<0.000000e+00> : vector<16x128xf32>
    %11 = tpu.matmul %9, %10, %cst_8 {dimension_numbers = #tpu.dot_dimension_numbers<[1], [0], [0], [1], [0, 0, 1, 1], [], []>} : vector<16x128xbf16>, vector<128x128xbf16>, vector<16x128xf32> -> vector<16x128xf32>
    %c0_9 = arith.constant 0 : index
    %c0_10 = arith.constant 0 : index
    %12 = vector.load %arg5[%c0_9, %c0_10] : memref<1x128xf32, #tpu.memory_space<vmem>>, vector<1x128xf32>
    %13 = vector.broadcast %12 : vector<1x128xf32> to vector<16x128xf32>
    %14 = arith.addf %11, %13 : vector<16x128xf32>
    %c0_11 = arith.constant 0 : index
    %c0_12 = arith.constant 0 : index
    %15 = vector.load %arg6[%c0_11, %c0_12] : memref<16x128xf32, #tpu.memory_space<vmem>>, vector<16x128xf32>
    tpu.vector_store %arg6[%c0_11, %c0_12], %14 {strides = array<i32>} : memref<16x128xf32, #tpu.memory_space<vmem>>, vector<16x128xf32>,
    return
  }
  func.func @transform_0(%arg0: i32) -> (i32, i32) {
    %c0_i32 = arith.constant 0 : i32
    %c0_i32_0 = arith.constant 0 : i32
    return %arg0, %c0_i32 : i32, i32
  }
  func.func @transform_1(%arg0: i32) -> (i32, i32) {
    %c0_i32 = arith.constant 0 : i32
    %c0_i32_0 = arith.constant 0 : i32
    %c0_i32_1 = arith.constant 0 : i32
    return %c0_i32, %c0_i32_0 : i32, i32
  }
  func.func @transform_2(%arg0: i32) -> (i32, i32) {
    %c0_i32 = arith.constant 0 : i32
    %c0_i32_0 = arith.constant 0 : i32
    %c0_i32_1 = arith.constant 0 : i32
    return %c0_i32, %c0_i32_0 : i32, i32
  }
  func.func @transform_3(%arg0: i32) -> (i32, i32) {
    %c0_i32 = arith.constant 0 : i32
    %c0_i32_0 = arith.constant 0 : i32
    %c0_i32_1 = arith.constant 0 : i32
    return %c0_i32, %c0_i32_0 : i32, i32
  }
  func.func @transform_4(%arg0: i32) -> (i32, i32) {
    %c0_i32 = arith.constant 0 : i32
    %c0_i32_0 = arith.constant 0 : i32
    %c0_i32_1 = arith.constant 0 : i32
    return %c0_i32, %c0_i32_0 : i32, i32
  }
  func.func @transform_5(%arg0: i32) -> (i32, i32) {
    %c0_i32 = arith.constant 0 : i32
    %c0_i32_0 = arith.constant 0 : i32
    return %arg0, %c0_i32 : i32, i32
  }
}

</mosaic_0001>

<bundles_post_ra>
// kernel: feed_forward.1
= control target key start
LH: loop header
LB: loop body
LE: loop exit
PB: predicated region body
PF: predicated region fallthrough
CT: control target
= control target key end

     0   :  { %10 = vsyncpa [#allocation3], 0  ;;  %s511_s0 = inlined_call_operand.vmem [shape: f32[16,128], index: 0, kind: input, shape index: {}]   ;;  %s512_s1 = inlined_call_operand.hbm [shape: bf16[128,128], index: 1, kind: input, shape index: {}]   ;;  %s513_s2 = inlined_call_operand.vmem [shape: f32[1,128], index: 2, kind: input, shape index: {}]   ;;  %s514_s3 = inlined_call_operand.hbm [shape: bf16[128,128], index: 3, kind: input, shape index: {}]   ;;  %s515_s4 = inlined_call_operand.vmem [shape: f32[1,128], index: 4, kind: input, shape index: {}]   ;;  %s516_s5 = inlined_call_operand.vmem [shape: f32[16,128], index: 5, kind: output, shape index: {}]  }
   0x1   :  { %11 = vsyncpa [#allocation5], 0  ;;  %s433_s18 = smov [#allocation2]   ;;  %s385_s22 = scalar_lea.hbm %s512_s1, 1024 }
   0x2   :  { %s19_s19 = sshll.u32 %s433_s18, 4  ;;  %p386_p0 = scmp.ne.s32.totalorder %s512_s1, %s385_s22  ;;  %s20_s19 = int_to_ptr.vmem [resolvable:$true] %s19_s19 }
   0x3   :  { %p389_p1 = scmp.lt.u32.totalorder %s385_s22, %s512_s1 }
   0x5   :  { %p391_p2 = pnand %p389_p1, %p386_p0 }
   0x7   :  { %394 = shalt.err (!%p391_p2)
}
   0x8   :  { %s395_s27 = scalar_lea.vmem %s20_s19, 1024  ;;  %p400_p4 = scmp.lt.s32.totalorder %s20_s19, %s20_s19 }
   0x9   :  { %p396_p3 = scmp.ne.s32.totalorder %s20_s19, %s395_s27  ;;  %p401_p5 = scmp.lt.s32.totalorder %s395_s27, %s395_s27 }
   0xb   :  { %p402_p6 = por %p401_p5, %p400_p4 }
   0xd   :  { %p403_p7 = pnand %p402_p6, %p396_p3 }
   0xf   :  { %406 = shalt.err (!%p403_p7)
}
  0x10   :  { %s434_s28 = smov 64   ;;  %s435_s29 = smov 4  }
  0x11   :  { %25 = dma.hbm_to_vmem [thread:$0]  %s512_s1, 1024, %s20_s19, [#allocation3], %s434_s28, %s434_s28, %s435_s29  }
  0x12   :  { %s436_s7 = smov [#allocation4]   ;;  %s407_s11 = scalar_lea.hbm %s514_s3, 1024 }
  0x13   :  { %s33_s8 = sshll.u32 %s436_s7, 4  ;;  %p408_p8 = scmp.ne.s32.totalorder %s514_s3, %s407_s11  ;;  %s34_s8 = int_to_ptr.vmem [resolvable:$true] %s33_s8 }
  0x14   :  { %p411_p9 = scmp.lt.u32.totalorder %s407_s11, %s514_s3 }
  0x16   :  { %p413_p10 = pnand %p411_p9, %p408_p8 }
  0x18   :  { %416 = shalt.err (!%p413_p10)
}
  0x19   :  { %s417_s16 = scalar_lea.vmem %s34_s8, 1024  ;;  %p422_p12 = scmp.lt.s32.totalorder %s34_s8, %s34_s8 }
  0x1a   :  { %p418_p11 = scmp.ne.s32.totalorder %s34_s8, %s417_s16  ;;  %p423_p13 = scmp.lt.s32.totalorder %s417_s16, %s417_s16 }
  0x1c   :  { %p424_p0 = por %p423_p13, %p422_p12 }
  0x1e   :  { %p425_p1 = pnand %p424_p0, %p418_p11 }
  0x20   :  { %428 = shalt.err (!%p425_p1)
}
  0x21   :  { %39 = dma.hbm_to_vmem [thread:$0]  %s514_s3, 1024, %s34_s8, [#allocation5], %s434_s28, %s434_s28, %s435_s29  }
  0x22   :  { %429 = dma.done.wait [#allocation3], 1024  }
  0x23   :  { %430 = vsyncadd [#allocation3], 4294966272 }
  0x24   :  { %431 = dma.done.wait [#allocation5], 1024  }
  0x25   :  { %432 = vsyncadd [#allocation5], 4294966272  ;;  %v437_v0 = vmov 0.0   ;;  %vm438_vm0 = vmmov 0   ;;  %v369_v1 = vld [vmem:[#allocation2] sm:$0xff]   ;;  %v370_v2 = vld [vmem:[#allocation2 + $0x8] sm:$0xff]  }
  0x26   :  { %323 = vmatprep.subr.bf16.mxu0 %v437_v0  ;;  %339 = vmatprep.mubr.msk.bf16.mxu0 %vm438_vm0, %v437_v0  ;;  %v371_v3 = vld [vmem:[#allocation2 + $0x10] sm:$0xff]   ;;  %v377_v4 = vld [vmem:[#allocation4] sm:$0xff]   ;;  %v372_v5 = vld [vmem:[#allocation2 + $0x18] sm:$0xff]  }
  0x27   :  { %343 = vmatprep.subr.bf16.mxu1 %v437_v0  ;;  %359 = vmatprep.mubr.msk.bf16.mxu1 %vm438_vm0, %v437_v0  ;;  %v378_v6 = vld [vmem:[#allocation4 + $0x8] sm:$0xff]   ;;  %v373_v7 = vld [vmem:[#allocation2 + $0x20] sm:$0xff]   ;;  %v379_v8 = vld [vmem:[#allocation4 + $0x10] sm:$0xff]  }
  0x28   :  { %324 = vmatpush3.bf16.msra.mxu0 %v369_v1  ;;  %344 = vmatpush3.bf16.msra.mxu1 %v377_v4  ;;  %v374_v9 = vld [vmem:[#allocation2 + $0x28] sm:$0xff]   ;;  %v380_v10 = vld [vmem:[#allocation4 + $0x18] sm:$0xff]   ;;  %v375_v11 = vld [vmem:[#allocation2 + $0x30] sm:$0xff]  }
  0x29   :  { %325 = vmatprep.subr.bf16.mxu0 %v437_v0  ;;  %345 = vmatprep.subr.bf16.mxu1 %v437_v0  ;;  %v381_v12 = vld [vmem:[#allocation4 + $0x20] sm:$0xff]   ;;  %v376_v13 = vld [vmem:[#allocation2 + $0x38] sm:$0xff]   ;;  %v50_v15 = vld [vmem:[%s511_s0 + $0x8] sm:$0xff] }
  0x2a   :  { %v49_v14 = vld [vmem:[%s511_s0] sm:$0xff]  ;;  %v382_v16 = vld [vmem:[#allocation4 + $0x28] sm:$0xff]   ;;  %v383_v18 = vld [vmem:[#allocation4 + $0x30] sm:$0xff]  }
  0x2b   :  { %v51_v17 = vpack.c.bf16 %v50_v15, %v49_v14  ;;  %v384_v19 = vld [vmem:[#allocation4 + $0x38] sm:$0xff]   ;;  %v287_v20 = vld [vmem:[%s513_s2] ss:$0 sm:$0xff] }
  0x2c   :  { %326 = vmatpush3.bf16.msra.mxu0 %v370_v2  ;;  %346 = vmatpush3.bf16.msra.mxu1 %v378_v6  ;;  %v296_v30 = vld [vmem:[%s515_s4] ss:$0 sm:$0xff] }
  0x2d   :  { %327 = vmatprep.subr.bf16.mxu0 %v437_v0  ;;  %347 = vmatprep.subr.bf16.mxu1 %v437_v0 }
  0x30   :  { %328 = vmatpush3.bf16.msra.mxu0 %v371_v3  ;;  %348 = vmatpush3.bf16.msra.mxu1 %v379_v8 }
  0x31   :  { %329 = vmatprep.subr.bf16.mxu0 %v437_v0  ;;  %349 = vmatprep.subr.bf16.mxu1 %v437_v0 }
  0x34   :  { %330 = vmatpush3.bf16.msra.mxu0 %v372_v5  ;;  %350 = vmatpush3.bf16.msra.mxu1 %v380_v10 }
  0x35   :  { %331 = vmatprep.subr.bf16.mxu0 %v437_v0  ;;  %351 = vmatprep.subr.bf16.mxu1 %v437_v0 }
  0x38   :  { %332 = vmatpush3.bf16.msra.mxu0 %v373_v7  ;;  %352 = vmatpush3.bf16.msra.mxu1 %v381_v12 }
  0x39   :  { %333 = vmatprep.subr.bf16.mxu0 %v437_v0  ;;  %353 = vmatprep.subr.bf16.mxu1 %v437_v0 }
  0x3c   :  { %334 = vmatpush3.bf16.msra.mxu0 %v374_v9  ;;  %354 = vmatpush3.bf16.msra.mxu1 %v382_v16 }
  0x3d   :  { %335 = vmatprep.subr.bf16.mxu0 %v437_v0  ;;  %355 = vmatprep.subr.bf16.mxu1 %v437_v0 }
  0x40   :  { %336 = vmatpush3.bf16.msra.mxu0 %v375_v11  ;;  %356 = vmatpush3.bf16.msra.mxu1 %v383_v18 }
  0x41   :  { %337 = vmatprep.subr.bf16.mxu0 %v437_v0  ;;  %357 = vmatprep.subr.bf16.mxu1 %v437_v0 }
  0x44   :  { %338 = vmatpush3.bf16.msra.mxu0 %v376_v13  ;;  %358 = vmatpush3.bf16.msra.mxu1 %v384_v19 }
  0x47   :  { %340 = vmatmul.mubr.bf16.vlgmr.msra.gmra.mrb[0].mxu0 %v51_v17 }
 0x11a   :  { %v157_v21 = vpop.f32.mrb[0].mxu0 }
 0x11b   :  { %v158_v22 = vadd.f32 %v287_v20, %v157_v21  ;;  %v341_v23 = vpop.f32.mrb[1].mxu0 }
 0x11c   :  { %v160_v24 = vpop.f32.mrb[2].mxu0 }
 0x11d   :  { %v161_v25 = vadd.f32 %v287_v20, %v160_v24  ;;  %v342_v26 = vpop.f32.mrb[3].mxu0  ;;  %v164_v27 = vmax.f32 %v158_v22, 0.0 }
 0x11f   :  { %v165_v28 = vmax.f32 %v161_v25, 0.0 }
 0x121   :  { %v166_v29 = vpack.c.bf16 %v165_v28, %v164_v27 }
 0x123   :  { %360 = vmatmul.mubr.bf16.vlgmr.msra.gmra.mrb[0].mxu1 %v166_v29 }
 0x1f6   :  { %v272_v31 = vpop.f32.mrb[0].mxu1 }
 0x1f7   :  { %v273_v32 = vadd.f32 %v296_v30, %v272_v31  ;;  %v361_v33 = vpop.f32.mrb[1].mxu1 }
 0x1f8   :  { %v275_v34 = vpop.f32.mrb[2].mxu1 }
 0x1f9   :  { %279 = vst [vmem:[%s516_s5] sm:$0xff] %v273_v32  ;;  %v276_v35 = vadd.f32 %v296_v30, %v275_v34  ;;  %v362_v36 = vpop.f32.mrb[3].mxu1 }
 0x1fb   :  { %280 = vst [vmem:[%s516_s5 + $0x8] sm:$0xff] %v276_v35 }
 0x1fc   :  { %285 = vsyncpa [#allocation3], 1 }
 0x1fd   :  { %286 = vsyncpa [#allocation5], 1 }

</bundles_post_ra>
